<compile_context>
chip_gen: v7x
topology: tpu7x:2x2x1
jax: 0.10.0
libtpu: 0.0.40
codegen_flags: <defaults>
</compile_context>

<pallas_src>
import jax
import jax.numpy as jnp
from jax import lax
from jax.experimental import pallas as pl
from jax.experimental.pallas import tpu as pltpu


# "Effectively -inf" but finite: avoids inf-inf -> NaN in the online LSE update.
# Plain Python float so it is NOT a captured jax-array constant in the kernel.
_NEG_BIG = -3.0e38


def _make_masked_ce_kernel(n_total, c_total, block_n, block_c):
    ragged_rows = (n_total % block_n) != 0
    ragged_cols = (c_total % block_c) != 0

    def kernel(logits_ref, targets_ref, mask_ref, out_ref, m_sc, s_sc, p_sc):
        i = pl.program_id(0)               # batch tile   ("parallel")
        j = pl.program_id(1)               # class tile   ("arbitrary", reduction)
        n_cls_tiles = pl.num_programs(1)

        @pl.when(j == 0)
        def _():
            m_sc[...] = jnp.full_like(m_sc, -jnp.inf)
            s_sc[...] = jnp.zeros_like(s_sc)
            p_sc[...] = jnp.zeros_like(p_sc)

        logits = logits_ref[...].astype(jnp.float32)        # (block_n, block_c)
        targets = targets_ref[...]                          # (block_n, 1) int32

        # (1, block_c) LOCAL column iota, shared by ragged masking and target
        # selection -> no (block_n, block_c) iota fill, no full-tile + j*block_c.
        cols = lax.broadcasted_iota(jnp.int32, (1, block_c), 1)

        if ragged_cols:
            # Padded class columns exist only in the LAST class tile.  Gate the
            # full-tile select behind lax.cond so every other tile skips it.
            # (The sentinel is safe: the last tile always has >= 1 real column
            #  and every earlier tile is full, so m_new never equals _NEG_BIG.)
            def _mask_last(lg):
                valid = cols < (c_total - j * block_c)      # (1, block_c)
                return jnp.where(valid, lg, _NEG_BIG)

            logits = lax.cond(j == n_cls_tiles - 1, _mask_last,
                              lambda lg: lg, logits)

        # ---- online log-sum-exp across class tiles ------------------------
        local_max = jnp.max(logits, axis=-1, keepdims=True)          # (block_n, 1)
        m_old = m_sc[...]
        m_new = jnp.maximum(m_old, local_max)
        s_sc[...] = (s_sc[...] * jnp.exp(m_old - m_new)
                     + jnp.sum(jnp.exp(logits - m_new), axis=-1, keepdims=True))
        m_sc[...] = m_new

        # ---- accumulate target-class logit (select; no one-hot multiply) ---
        hit = cols == (targets - j * block_c)                # (block_n, block_c)
        p_sc[...] += jnp.sum(jnp.where(hit, logits, 0.0), axis=-1, keepdims=True)

        # ---- finalize on the last class tile -------------------------------
        @pl.when(j == n_cls_tiles - 1)
        def _():
            lse = m_sc[...] + jnp.log(s_sc[...])                      # (block_n, 1)
            loss = lse - p_sc[...]                                    # CE, reduction='none'
            masked = loss * mask_ref[...].astype(jnp.float32)
            if ragged_rows:
                row_ids = (lax.broadcasted_iota(jnp.int32, (block_n, 1), 0)
                           + i * block_n)
                # Zero via select (not multiply) so garbage/NaN padded rows
                # cannot leak into the sum.
                masked = jnp.where(row_ids < n_total, masked, 0.0)
            out_ref[...] = masked

    return kernel


def masked_cross_entropy_loss(logits, targets, mask, *, block_n=None, block_c=None,
                              vmem_limit_bytes=None):
    """logits: (N, C) f32 or bf16 (bf16 is the fast path: half the HBM traffic,
    cast to f32 inside VMEM), targets: (N,) int, mask: (N,) -> scalar f32."""
    n, c = logits.shape
    itemsize = jnp.dtype(logits.dtype).itemsize
    targets2d = targets.reshape(n, 1).astype(jnp.int32)
    mask2d = mask.reshape(n, 1).astype(jnp.float32)

    # ---- batch tile --------------------------------------------------------
    if block_n is None:
        if n > 512:
            block_n = 256
        else:
            # Guarantee >= 2 batch tiles when splittable so the "parallel"
            # batch axis shards across both v7x TensorCores.
            block_n = max(8, ((-(-n // 2) + 7) // 8) * 8)   # ceil(n/2) -> mult of 8
            if block_n >= n:
                block_n = n
    block_n = min(block_n, n)
    if block_n != n:
        block_n = max(8, (block_n // 8) * 8)
        if block_n >= n:
            block_n = n

    # ---- class tile: sized in BYTES so bf16 gets 2x wider tiles ------------
    if block_c is None:
        target_tile_bytes = 4 * 1024 * 1024          # ~4 MiB logits tile
        bc = max(128, target_tile_bytes // max(1, block_n * itemsize))
        bc = min(bc, 16384)
        block_c = c if c <= bc else (bc // 128) * 128
    block_c = min(block_c, c)
    if block_c != c:
        block_c = max(128, (block_c // 128) * 128)
        if block_c >= c:
            block_c = c

    # Guard the "(8,128)-aligned or full-extent" BlockSpec rule.
    assert block_n == n or block_n % 8 == 0, (block_n, n)
    assert block_c == c or block_c % 128 == 0, (block_c, c)

    nb = pl.cdiv(n, block_n)
    ncls = pl.cdiv(c, block_c)

    # ---- scoped VMEM budget tied to the chosen tiles ------------------------
    if vmem_limit_bytes is None:
        tile_in = block_n * block_c * itemsize
        tile_f32 = block_n * block_c * 4
        # double-buffered logits input + ~4 full-tile f32 temporaries
        # (f32 cast, exp, selects) + misc; clamped to fit v7x's 64 MiB/TC VMEM.
        vmem_limit_bytes = min(max(2 * tile_in + 4 * tile_f32 + (1 << 20),
                                   32 * 1024 * 1024),
                               60 * 1024 * 1024)

    kernel = _make_masked_ce_kernel(n, c, block_n, block_c)

    cost = pl.CostEstimate(
        flops=6 * n * c,
        transcendentals=n * c + n,
        bytes_accessed=(logits.size * itemsize
                        + targets2d.size * 4 + mask2d.size * 4
                        + nb * block_n * 4),
    )

    partial_losses = pl.pallas_call(
        kernel,
        out_shape=jax.ShapeDtypeStruct((nb * block_n, 1), jnp.float32),
        grid_spec=pltpu.PrefetchScalarGridSpec(
            num_scalar_prefetch=0,
            grid=(nb, ncls),
            in_specs=[
                pl.BlockSpec((block_n, block_c), lambda i, j: (i, j)),
                pl.BlockSpec((block_n, 1), lambda i, j: (i, 0)),
                pl.BlockSpec((block_n, 1), lambda i, j: (i, 0)),
            ],
            out_specs=pl.BlockSpec((block_n, 1), lambda i, j: (i, 0)),
            scratch_shapes=[
                pltpu.VMEM((block_n, 1), jnp.float32),   # running row max
                pltpu.VMEM((block_n, 1), jnp.float32),   # running sum-exp
                pltpu.VMEM((block_n, 1), jnp.float32),   # accumulated target logit
            ],
        ),
        compiler_params=pltpu.CompilerParams(
            dimension_semantics=("parallel", "arbitrary"),
            vmem_limit_bytes=vmem_limit_bytes,
        ),
        cost_estimate=cost,
    )(logits, targets2d, mask2d)

    # Tiny final reduction + exact mean over the full batch (padded rows are 0).
    return jnp.sum(partial_losses) * (1.0 / n)


def _reference(logits, targets, mask):
    logp = jax.nn.log_softmax(logits.astype(jnp.float32), axis=-1)
    picked = jnp.take_along_axis(logp, targets[:, None].astype(jnp.int32), axis=-1)[:, 0]
    loss = -picked
    return jnp.mean(loss * mask.astype(jnp.float32))


if __name__ == "__main__":
    key = jax.random.PRNGKey(0)
    keys = jax.random.split(key, 9)

    # Test 1: small single-tile shapes (batch=8, classes=32).
    N, C = 8, 32
    logits = jax.random.normal(keys[0], (N, C), dtype=jnp.float32)
    targets = jax.random.randint(keys[1], (N,), 0, C, dtype=jnp.int32)
    mask = (jax.random.uniform(keys[2], (N,)) > 0.3).astype(jnp.float32)

    out = jax.block_until_ready(masked_cross_entropy_loss(logits, targets, mask))
    ref = _reference(logits, targets, mask)
    assert jnp.allclose(out, ref, atol=1e-5, rtol=1e-5), (out, ref)

    # Test 2: tiled path (ragged batch tile, ragged class tile, multi-step
    # online log-sum-exp, last-tile-only column masking) with small blocks.
    N2, C2 = 20, 320
    logits2 = jax.random.normal(keys[3], (N2, C2), dtype=jnp.float32)
    targets2 = jax.random.randint(keys[4], (N2,), 0, C2, dtype=jnp.int32)
    mask2 = (jax.random.uniform(keys[5], (N2,)) > 0.5).astype(jnp.float32)

    out2 = jax.block_until_ready(
        masked_cross_entropy_loss(logits2, targets2, mask2, block_n=8, block_c=128))
    ref2 = _reference(logits2, targets2, mask2)
    assert jnp.allclose(out2, ref2, atol=1e-5, rtol=1e-5), (out2, ref2)

    # Test 3: bf16 fast path with auto tiling (2 batch tiles, full class tile).
    N3, C3 = 16, 384
    logits3 = jax.random.normal(keys[6], (N3, C3), dtype=jnp.float32).astype(jnp.bfloat16)
    targets3 = jax.random.randint(keys[7], (N3,), 0, C3, dtype=jnp.int32)
    mask3 = (jax.random.uniform(keys[8], (N3,)) > 0.5).astype(jnp.float32)

    out3 = jax.block_until_ready(masked_cross_entropy_loss(logits3, targets3, mask3))
    ref3 = _reference(logits3, targets3, mask3)
    assert jnp.allclose(out3, ref3, atol=2e-5, rtol=2e-5), (out3, ref3)

    print("KERNEL_OK")
</pallas_src>

<mosaic_0001>
module attributes {stable_mosaic.version = 11 : i64} {
  func.func @kernel(%arg0: i32, %arg1: i32, %arg2: memref<8x32xf32, #tpu.memory_space<vmem>>, %arg3: memref<8x1xi32, #tpu.memory_space<vmem>>, %arg4: memref<8x1xf32, #tpu.memory_space<vmem>>, %arg5: memref<8x1xf32, #tpu.memory_space<vmem>>, %arg6: memref<8x1xf32, #tpu.memory_space<vmem>>, %arg7: memref<8x1xf32, #tpu.memory_space<vmem>>, %arg8: memref<8x1xf32, #tpu.memory_space<vmem>>) attributes {dimension_semantics = [#tpu.dimension_semantics<parallel>, #tpu.dimension_semantics<arbitrary>], iteration_bounds = array<i64: 1, 1>, scalar_prefetch = 0 : i64, scratch_operands = 3 : i64, tpu.core_type = #tpu.core_type<tc>, window_params = [{transform_indices = @transform_0, window_bounds = array<i64: 8, 32>}, {transform_indices = @transform_1, window_bounds = array<i64: 8, 1>}, {transform_indices = @transform_2, window_bounds = array<i64: 8, 1>}, {transform_indices = @transform_3, window_bounds = array<i64: 8, 1>}]} {
    %c0_i32 = arith.constant 0 : i32
    %0 = arith.cmpi eq, %arg1, %c0_i32 : i32
    %1 = arith.extui %0 : i1 to i32
    %c0_i32_0 = arith.constant 0 : i32
    %2 = arith.cmpi ne, %1, %c0_i32_0 : i32
    scf.if %2 {
      %cst_21 = arith.constant 0xFF800000 : f32
      %38 = vector.broadcast %cst_21 : f32 to vector<8x1xf32>
      %c0_22 = arith.constant 0 : index
      %c0_23 = arith.constant 0 : index
      %39 = vector.load %arg6[%c0_22, %c0_23] : memref<8x1xf32, #tpu.memory_space<vmem>>, vector<8x1xf32>
      tpu.vector_store %arg6[%c0_22, %c0_23], %38 {strides = array<i32>} : memref<8x1xf32, #tpu.memory_space<vmem>>, vector<8x1xf32>,
      %cst_24 = arith.constant 0.000000e+00 : f32
      %40 = vector.broadcast %cst_24 : f32 to vector<8x1xf32>
      %c0_25 = arith.constant 0 : index
      %c0_26 = arith.constant 0 : index
      %41 = vector.load %arg7[%c0_25, %c0_26] : memref<8x1xf32, #tpu.memory_space<vmem>>, vector<8x1xf32>
      tpu.vector_store %arg7[%c0_25, %c0_26], %40 {strides = array<i32>} : memref<8x1xf32, #tpu.memory_space<vmem>>, vector<8x1xf32>,
      %cst_27 = arith.constant 0.000000e+00 : f32
      %42 = vector.broadcast %cst_27 : f32 to vector<8x1xf32>
      %c0_28 = arith.constant 0 : index
      %c0_29 = arith.constant 0 : index
      %43 = vector.load %arg8[%c0_28, %c0_29] : memref<8x1xf32, #tpu.memory_space<vmem>>, vector<8x1xf32>
      tpu.vector_store %arg8[%c0_28, %c0_29], %42 {strides = array<i32>} : memref<8x1xf32, #tpu.memory_space<vmem>>, vector<8x1xf32>,
    } else {
    }
    %c0 = arith.constant 0 : index
    %c0_1 = arith.constant 0 : index
    %3 = vector.load %arg2[%c0, %c0_1] : memref<8x32xf32, #tpu.memory_space<vmem>>, vector<8x32xf32>
    %c0_2 = arith.constant 0 : index
    %c0_3 = arith.constant 0 : index
    %4 = vector.load %arg3[%c0_2, %c0_3] : memref<8x1xi32, #tpu.memory_space<vmem>>, vector<8x1xi32>
    %5 = tpu.iota {dimensions = array<i32: 1>} : vector<1x32xi32>
    %cst = arith.constant dense<0xFF800000> : vector<8xf32>
    %6 = vector.multi_reduction <maximumf>, %3, %cst [1] : vector<8x32xf32> to vector<8xf32>
    %7 = vector.shape_cast %6 : vector<8xf32> to vector<8x1xf32>
    %c0_4 = arith.constant 0 : index
    %c0_5 = arith.constant 0 : index
    %8 = vector.load %arg6[%c0_4, %c0_5] : memref<8x1xf32, #tpu.memory_space<vmem>>, vector<8x1xf32>
    %9 = arith.maximumf %8, %7 : vector<8x1xf32>
    %c0_6 = arith.constant 0 : index
    %c0_7 = arith.constant 0 : index
    %10 = vector.load %arg7[%c0_6, %c0_7] : memref<8x1xf32, #tpu.memory_space<vmem>>, vector<8x1xf32>
    %11 = arith.subf %8, %9 : vector<8x1xf32>
    %12 = math.exp %11 : vector<8x1xf32>
    %13 = arith.mulf %10, %12 : vector<8x1xf32>
    %14 = vector.broadcast %9 : vector<8x1xf32> to vector<8x32xf32>
    %15 = arith.subf %3, %14 : vector<8x32xf32>
    %16 = math.exp %15 : vector<8x32xf32>
    %cst_8 = arith.constant dense<0.000000e+00> : vector<8xf32>
    %17 = vector.multi_reduction <add>, %16, %cst_8 [1] : vector<8x32xf32> to vector<8xf32>
    %18 = vector.shape_cast %17 : vector<8xf32> to vector<8x1xf32>
    %19 = arith.addf %13, %18 : vector<8x1xf32>
    %c0_9 = arith.constant 0 : index
    %c0_10 = arith.constant 0 : index
    %20 = vector.load %arg7[%c0_9, %c0_10] : memref<8x1xf32, #tpu.memory_space<vmem>>, vector<8x1xf32>
    tpu.vector_store %arg7[%c0_9, %c0_10], %19 {strides = array<i32>} : memref<8x1xf32, #tpu.memory_space<vmem>>, vector<8x1xf32>,
    %c0_11 = arith.constant 0 : index
    %c0_12 = arith.constant 0 : index
    %21 = vector.load %arg6[%c0_11, %c0_12] : memref<8x1xf32, #tpu.memory_space<vmem>>, vector<8x1xf32>
    tpu.vector_store %arg6[%c0_11, %c0_12], %9 {strides = array<i32>} : memref<8x1xf32, #tpu.memory_space<vmem>>, vector<8x1xf32>,
    %c32_i32 = arith.constant 32 : i32
    %22 = arith.muli %arg1, %c32_i32 : i32
    %23 = vector.broadcast %22 : i32 to vector<8x1xi32>
    %24 = arith.subi %4, %23 : vector<8x1xi32>
    %25 = vector.broadcast %5 : vector<1x32xi32> to vector<8x32xi32>
    %26 = vector.broadcast %24 : vector<8x1xi32> to vector<8x32xi32>
    %27 = arith.cmpi eq, %25, %26 : vector<8x32xi32>
    %c0_13 = arith.constant 0 : index
    %c0_14 = arith.constant 0 : index
    %28 = vector.load %arg8[%c0_13, %c0_14] : memref<8x1xf32, #tpu.memory_space<vmem>>, vector<8x1xf32>
    %cst_15 = arith.constant 0.000000e+00 : f32
    %29 = vector.broadcast %cst_15 : f32 to vector<8x32xf32>
    %30 = arith.select %27, %3, %29 : vector<8x32xi1>, vector<8x32xf32>
    %cst_16 = arith.constant dense<0.000000e+00> : vector<8xf32>
    %31 = vector.multi_reduction <add>, %30, %cst_16 [1] : vector<8x32xf32> to vector<8xf32>
    %32 = vector.shape_cast %31 : vector<8xf32> to vector<8x1xf32>
    %33 = arith.addf %28, %32 : vector<8x1xf32>
    %c0_17 = arith.constant 0 : index
    %c0_18 = arith.constant 0 : index
    %34 = vector.load %arg8[%c0_17, %c0_18] : memref<8x1xf32, #tpu.memory_space<vmem>>, vector<8x1xf32>
    tpu.vector_store %arg8[%c0_17, %c0_18], %33 {strides = array<i32>} : memref<8x1xf32, #tpu.memory_space<vmem>>, vector<8x1xf32>,
    %c0_i32_19 = arith.constant 0 : i32
    %35 = arith.cmpi eq, %arg1, %c0_i32_19 : i32
    %36 = arith.extui %35 : i1 to i32
    %c0_i32_20 = arith.constant 0 : i32
    %37 = arith.cmpi ne, %36, %c0_i32_20 : i32
    scf.if %37 {
      %c0_21 = arith.constant 0 : index
      %c0_22 = arith.constant 0 : index
      %38 = vector.load %arg6[%c0_21, %c0_22] : memref<8x1xf32, #tpu.memory_space<vmem>>, vector<8x1xf32>
      %c0_23 = arith.constant 0 : index
      %c0_24 = arith.constant 0 : index
      %39 = vector.load %arg7[%c0_23, %c0_24] : memref<8x1xf32, #tpu.memory_space<vmem>>, vector<8x1xf32>
      %40 = math.log %39 : vector<8x1xf32>
      %41 = arith.addf %38, %40 : vector<8x1xf32>
      %c0_25 = arith.constant 0 : index
      %c0_26 = arith.constant 0 : index
      %42 = vector.load %arg8[%c0_25, %c0_26] : memref<8x1xf32, #tpu.memory_space<vmem>>, vector<8x1xf32>
      %43 = arith.subf %41, %42 : vector<8x1xf32>
      %c0_27 = arith.constant 0 : index
      %c0_28 = arith.constant 0 : index
      %44 = vector.load %arg4[%c0_27, %c0_28] : memref<8x1xf32, #tpu.memory_space<vmem>>, vector<8x1xf32>
      %45 = arith.mulf %43, %44 : vector<8x1xf32>
      %c0_29 = arith.constant 0 : index
      %c0_30 = arith.constant 0 : index
      %46 = vector.load %arg5[%c0_29, %c0_30] : memref<8x1xf32, #tpu.memory_space<vmem>>, vector<8x1xf32>
      tpu.vector_store %arg5[%c0_29, %c0_30], %45 {strides = array<i32>} : memref<8x1xf32, #tpu.memory_space<vmem>>, vector<8x1xf32>,
    } else {
    }
    return
  }
  func.func @transform_0(%arg0: i32, %arg1: i32) -> (i32, i32) {
    %c0_i32 = arith.constant 0 : i32
    return %arg0, %arg1 : i32, i32
  }
  func.func @transform_1(%arg0: i32, %arg1: i32) -> (i32, i32) {
    %c0_i32 = arith.constant 0 : i32
    %c0_i32_0 = arith.constant 0 : i32
    return %arg0, %c0_i32 : i32, i32
  }
  func.func @transform_2(%arg0: i32, %arg1: i32) -> (i32, i32) {
    %c0_i32 = arith.constant 0 : i32
    %c0_i32_0 = arith.constant 0 : i32
    return %arg0, %c0_i32 : i32, i32
  }
  func.func @transform_3(%arg0: i32, %arg1: i32) -> (i32, i32) {
    %c0_i32 = arith.constant 0 : i32
    %c0_i32_0 = arith.constant 0 : i32
    return %arg0, %c0_i32 : i32, i32
  }
}

</mosaic_0001>

<bundles_post_ra>
// kernel: tpu_custom_call.1
= control target key start
LH: loop header
LB: loop body
LE: loop exit
PB: predicated region body
PF: predicated region fallthrough
CT: control target
= control target key end

     0   :  { %vm26_vm0 = vcmask 261120   ;;  %vm18_vm1 = vcmask 7168   ;;  %v94_v1 = vmov -inf   ;;  %v95_v3 = vmov 0   ;;  %s139_s0 = inlined_call_operand.vmem [shape: f32[8,32], index: 0, kind: input, shape index: {}]   ;;  %s140_s1 = inlined_call_operand.vmem [shape: s32[8,1], index: 1, kind: input, shape index: {}]   ;;  %s141_s2 = inlined_call_operand.vmem [shape: f32[8,1], index: 2, kind: input, shape index: {}]   ;;  %s142_s3 = inlined_call_operand.vmem [shape: f32[8,1], index: 3, kind: output, shape index: {}]  }
   0x1   :  { %v22_v0 = vld [vmem:[%s139_s0] sm:$0xff]  ;;  %19 = vst.msk [vmem:[#allocation2] sm:$0xff] %vm18_vm1, %v94_v1  ;;  %86 = vset.pattern.permute.xlu0 %v95_v3  ;;  %87 = vset.pattern.permute.xlu1 %v95_v3  ;;  %v96_v4 = vmov 0.0   ;;  %v24_v13 = vlaneseq }
   0x2   :  { %v27_v2 = vsel %vm26_vm0, %v22_v0, -inf  ;;  %20 = vst.msk [vmem:[#allocation3] sm:$0xff] %vm18_vm1, %v96_v4  ;;  %21 = vst.msk [vmem:[#allocation4] sm:$0xff] %vm18_vm1, %v96_v4  ;;  %v23_v5 = vld [vmem:[%s140_s1] sm:$0xff] }
   0x3   :  { %28 = vmax.xlane.f32.xlu0 %v27_v2  ;;  %56 = vperm.xlu1 %87, %v23_v5   ;;  %v25_v14 = vand.u32 127, %v24_v13  ;;  %v76_v35 = vld [vmem:[%s141_s2] sm:$0xff] }
   0x8   :  { %v30_v6 = vld [vmem:[#allocation2] sm:$0xff] }
   0x9   :  { %v32_v22 = vld [vmem:[#allocation3] sm:$0xff]  ;;  %v59_v26 = vld [vmem:[#allocation4] sm:$0xff] }
  0x82   :  { %v57_v15 = vpop.permute.xlu1 %56 }
  0x83   :  { %vm58_vm2 = vcmp.eq.s32.totalorder %v25_v14, %v57_v15 }
  0x84   :  { %v60_v17 = vsel %vm58_vm2, %v22_v0, 0.0 }
  0x85   :  { %v61_v19 = vsel %vm26_vm0, %v60_v17, 0.0 }
  0x90   :  { %v29_v7 = vpop.xlane.xlu0 %28 }
  0x91   :  { %v31_v8 = vmax.f32 %v30_v6, %v29_v7 }
  0x93   :  { %v33_v9 = vsub.f32 %v30_v6, %v31_v8  ;;  %51 = vst.msk [vmem:[#allocation2] sm:$0xff] %vm18_vm1, %v31_v8  ;;  %39 = vperm.xlu0 %86, %v31_v8  }
  0x95   :  { %v34_v20 = vmul.f32 1.442695, %v33_v9 }
  0x9a   :  { %v69_v32 = vld [vmem:[#allocation2] sm:$0xff] }
 0x112   :  { %v40_v10 = vpop.permute.xlu0 %39 }
 0x113   :  { %v42_v11 = vsub.f32 %v22_v0, %v40_v10 }
 0x115   :  { %v43_v12 = vmul.f32 1.442695, %v42_v11 }
 0x117   :  { %88 = vpow2.f32 %v43_v12 }
 0x118   :  { %90 = vpow2.f32 %v34_v20 }
 0x121   :  { %v89_v16 = vpop.eup %88 }
 0x122   :  { %v45_v18 = vsel %vm26_vm0, %v89_v16, 0.0  ;;  %v91_v21 = vpop.eup %90 }
 0x123   :  { %46 = vadd.xlane.f32.xlu1 %v45_v18  ;;  %v36_v23 = vmul.f32 %v91_v21, %v32_v22 }
 0x127   :  { %62 = vadd.xlane.f32.xlu1 %v61_v19 }
 0x1b0   :  { %v47_v24 = vpop.xlane.xlu1 %46 }
 0x1b1   :  { %v48_v25 = vadd.f32 %v47_v24, %v36_v23 }
 0x1b3   :  { %50 = vst.msk [vmem:[#allocation3] sm:$0xff] %vm18_vm1, %v48_v25 }
 0x1b4   :  { %v63_v27 = vpop.xlane.xlu1 %62 }
 0x1b5   :  { %v64_v28 = vadd.f32 %v63_v27, %v59_v26 }
 0x1b7   :  { %65 = vst.msk [vmem:[#allocation4] sm:$0xff] %vm18_vm1, %v64_v28 }
 0x1ba   :  { %v70_v29 = vld [vmem:[#allocation3] sm:$0xff] }
 0x1bb   :  { %92 = vlog2.f32 %v70_v29 }
 0x1be   :  { %v74_v33 = vld [vmem:[#allocation4] sm:$0xff] }
 0x1c5   :  { %v93_v30 = vpop.eup %92 }
 0x1c6   :  { %v72_v31 = vmul.f32 0.6931472, %v93_v30 }
 0x1c8   :  { %v73_v34 = vadd.f32 %v72_v31, %v69_v32 }
 0x1ca   :  { %v75_v36 = vsub.f32 %v73_v34, %v74_v33 }
 0x1cc   :  { %v77_v37 = vmul.f32 %v76_v35, %v75_v36 }
 0x1ce   :  { %78 = vst.msk [vmem:[%s142_s3] sm:$0xff] %vm18_vm1, %v77_v37 }

</bundles_post_ra>
